<compile_context>
chip_gen: v5e
topology: v5e:2x2
jax: 0.10.0
libtpu: 0.0.40
codegen_flags: <defaults>
</compile_context>

<pallas_src>
import functools

import jax
import jax.numpy as jnp
from jax.experimental import pallas as pl
from jax.experimental.pallas import tpu as pltpu


def _round_up(v, m):
    return ((v + m - 1) // m) * m


def _so3_tp_mlp_kernel(xt_ref, w1t_ref, b1_ref, w2t_ref, b2_ref, ot_ref, *, d):
    # xt_ref block: (d*d, TILE_E) -- edges on the lane axis.
    xt = xt_ref[...].astype(jnp.float32)            # (d*d, TILE_E)
    te = xt.shape[1]

    # Batched symmetric tensor product on the VPU (no MXU micro-matmuls):
    #   tp_t[i*d + k, e] = sum_j x3[e, i, j] * x3[e, k, j]
    # with xr[i, j, :] == x3[:, i, j] (edges on lanes).
    xr = xt.reshape(d, d, te)                       # (d, d, TILE_E)
    tp = None
    for j in range(d):                              # d is tiny & static -> fully unrolled
        a = xr[:, j, :]                             # (d, TILE_E)
        term = a[:, None, :] * a[None, :, :]        # (d, d, TILE_E)  lane-dense FMAs
        tp = term if tp is None else tp + term
    tp_t = tp.reshape(d * d, te)                    # (d*d, TILE_E) == tp_flat^T

    # MLP, weight-stationary; edges ride the MXU N dimension:
    #   h^T   = W1^T @ tp_flat^T + b1      -> (hidden, TILE_E)
    #   out^T = W2^T @ relu(h^T)  + b2     -> (out,    TILE_E)
    h = jnp.dot(w1t_ref[...], tp_t, preferred_element_type=jnp.float32) + b1_ref[...]
    h = jnp.maximum(h, 0.0)
    out = jnp.dot(w2t_ref[...], h, preferred_element_type=jnp.float32) + b2_ref[...]

    ot_ref[...] = out.astype(ot_ref.dtype)


def so3_tensor_product_layer(x, w1, b1, w2, b2, *, input_dim, output_dim,
                             tile_e=2048):
    """x: (E, d*d) f32.  w1: (d*d, 2*out), b1: (1, 2*out) or (2*out,),
    w2: (2*out, out), b2: (1, out) or (out,).  Returns (E, out) f32.

    Weights are stored as (in_features, out_features), i.e. transposed w.r.t.
    nn.Linear.weight; the wrapper re-transposes them for the lane-dense kernel."""
    e, d2 = x.shape
    d = input_dim
    hidden = 2 * output_dim
    assert d2 == d * d
    assert w1.shape == (d2, hidden) and w2.shape == (hidden, output_dim)

    # Lane-dense tiling along the edge axis; no divisibility requirement on E.
    tile = max(128, _round_up(min(int(tile_e), _round_up(e, 128)), 128))
    e_pad = _round_up(e, tile)

    # Wrapper-side layout plumbing (cheap): edges -> lane axis, weights transposed,
    # biases as column vectors that broadcast over lanes.
    xt = jnp.zeros((d2, e_pad), x.dtype).at[:, :e].set(x.T)    # (d*d, E_pad)
    w1t = w1.T                                                  # (hidden, d*d)
    w2t = w2.T                                                  # (out, hidden)
    b1c = jnp.reshape(b1, (hidden, 1))
    b2c = jnp.reshape(b2, (output_dim, 1))

    kernel = functools.partial(_so3_tp_mlp_kernel, d=d)

    grid_spec = pltpu.PrefetchScalarGridSpec(
        num_scalar_prefetch=0,
        grid=(e_pad // tile,),
        in_specs=[
            pl.BlockSpec((d2, tile), lambda i: (0, i)),            # x^T tile
            pl.BlockSpec((hidden, d2), lambda i: (0, 0)),          # W1^T (resident)
            pl.BlockSpec((hidden, 1), lambda i: (0, 0)),           # b1
            pl.BlockSpec((output_dim, hidden), lambda i: (0, 0)),  # W2^T (resident)
            pl.BlockSpec((output_dim, 1), lambda i: (0, 0)),       # b2
        ],
        out_specs=pl.BlockSpec((output_dim, tile), lambda i: (0, i)),
    )

    out_t = pl.pallas_call(
        kernel,
        out_shape=jax.ShapeDtypeStruct((output_dim, e_pad), jnp.float32),
        grid_spec=grid_spec,
        compiler_params=pltpu.CompilerParams(
            dimension_semantics=("parallel",),   # shards grid steps across TCs on v7x
        ),
    )(xt, w1t, b1c, w2t, b2c)

    # Back to the module's (E, out) layout; drop padded edges.
    return out_t[:, :e].T


def so3_reference(x, w1, b1, w2, b2, *, input_dim):
    e = x.shape[0]
    x3 = x.reshape(e, input_dim, input_dim)
    tp = jnp.einsum("eij,ekj->eik", x3, x3)
    tp_flat = tp.reshape(e, input_dim * input_dim)
    h = jnp.maximum(tp_flat @ w1 + jnp.reshape(b1, (1, -1)), 0.0)
    return h @ w2 + jnp.reshape(b2, (1, -1))


if __name__ == "__main__":
    INPUT_DIM = 4          # d
    OUTPUT_DIM = 32
    HIDDEN = 2 * OUTPUT_DIM
    NUM_EDGES = 200        # deliberately NOT a multiple of the tile -> exercises padding

    key = jax.random.PRNGKey(0)
    kx, kw1, kb1, kw2, kb2 = jax.random.split(key, 5)

    x = jax.random.normal(kx, (NUM_EDGES, INPUT_DIM * INPUT_DIM), dtype=jnp.float32)

    # PyTorch-Linear-style uniform init; stored as (in_features, out_features).
    lim1 = 1.0 / jnp.sqrt(jnp.float32(INPUT_DIM * INPUT_DIM))
    lim2 = 1.0 / jnp.sqrt(jnp.float32(HIDDEN))
    w1 = jax.random.uniform(kw1, (INPUT_DIM * INPUT_DIM, HIDDEN),
                            minval=-lim1, maxval=lim1, dtype=jnp.float32)
    b1 = jax.random.uniform(kb1, (1, HIDDEN), minval=-lim1, maxval=lim1,
                            dtype=jnp.float32)
    w2 = jax.random.uniform(kw2, (HIDDEN, OUTPUT_DIM),
                            minval=-lim2, maxval=lim2, dtype=jnp.float32)
    b2 = jax.random.uniform(kb2, (1, OUTPUT_DIM), minval=-lim2, maxval=lim2,
                            dtype=jnp.float32)

    out = so3_tensor_product_layer(
        x, w1, b1, w2, b2,
        input_dim=INPUT_DIM, output_dim=OUTPUT_DIM, tile_e=2048)
    out = jax.block_until_ready(out)

    ref = so3_reference(x, w1, b1, w2, b2, input_dim=INPUT_DIM)
    assert out.shape == (NUM_EDGES, OUTPUT_DIM)
    assert jnp.allclose(out, ref, atol=1e-4, rtol=1e-4), "mismatch vs JAX reference"

    print("KERNEL_OK")
</pallas_src>

<mosaic_0001>
module attributes {stable_mosaic.version = 11 : i64} {
  func.func @_so3_tp_mlp_kernel(%arg0: i32, %arg1: memref<16x256xf32, #tpu.memory_space<vmem>>, %arg2: memref<64x16xf32, #tpu.memory_space<vmem>>, %arg3: memref<64x1xf32, #tpu.memory_space<vmem>>, %arg4: memref<32x64xf32, #tpu.memory_space<vmem>>, %arg5: memref<32x1xf32, #tpu.memory_space<vmem>>, %arg6: memref<32x256xf32, #tpu.memory_space<vmem>>) attributes {dimension_semantics = [#tpu.dimension_semantics<parallel>], iteration_bounds = array<i64: 1>, scalar_prefetch = 0 : i64, scratch_operands = 0 : i64, tpu.core_type = #tpu.core_type<tc>, window_params = [{transform_indices = @transform_0, window_bounds = array<i64: 16, 256>}, {pipeline_mode = #tpu.pipeline_mode<synchronous>, transform_indices = @transform_1, window_bounds = array<i64: 64, 16>}, {pipeline_mode = #tpu.pipeline_mode<synchronous>, transform_indices = @transform_2, window_bounds = array<i64: 64, 1>}, {pipeline_mode = #tpu.pipeline_mode<synchronous>, transform_indices = @transform_3, window_bounds = array<i64: 32, 64>}, {pipeline_mode = #tpu.pipeline_mode<synchronous>, transform_indices = @transform_4, window_bounds = array<i64: 32, 1>}, {transform_indices = @transform_5, window_bounds = array<i64: 32, 256>}]} {
    %c0 = arith.constant 0 : index
    %c0_0 = arith.constant 0 : index
    %0 = vector.load %arg1[%c0, %c0_0] : memref<16x256xf32, #tpu.memory_space<vmem>>, vector<16x256xf32>
    %1 = vector.shape_cast %0 : vector<16x256xf32> to vector<4x4x256xf32>
    %2 = vector.extract_strided_slice %1 {offsets = [0, 0, 0], sizes = [4, 1, 256], strides = [1, 1, 1]} : vector<4x4x256xf32> to vector<4x1x256xf32>
    %3 = vector.shape_cast %2 : vector<4x1x256xf32> to vector<4x256xf32>
    %4 = vector.shape_cast %3 : vector<4x256xf32> to vector<4x1x256xf32>
    %5 = vector.shape_cast %3 : vector<4x256xf32> to vector<1x4x256xf32>
    %6 = vector.broadcast %4 : vector<4x1x256xf32> to vector<4x4x256xf32>
    %7 = vector.broadcast %5 : vector<1x4x256xf32> to vector<4x4x256xf32>
    %8 = arith.mulf %6, %7 : vector<4x4x256xf32>
    %9 = vector.extract_strided_slice %1 {offsets = [0, 1, 0], sizes = [4, 1, 256], strides = [1, 1, 1]} : vector<4x4x256xf32> to vector<4x1x256xf32>
    %10 = vector.shape_cast %9 : vector<4x1x256xf32> to vector<4x256xf32>
    %11 = vector.shape_cast %10 : vector<4x256xf32> to vector<4x1x256xf32>
    %12 = vector.shape_cast %10 : vector<4x256xf32> to vector<1x4x256xf32>
    %13 = vector.broadcast %11 : vector<4x1x256xf32> to vector<4x4x256xf32>
    %14 = vector.broadcast %12 : vector<1x4x256xf32> to vector<4x4x256xf32>
    %15 = arith.mulf %13, %14 : vector<4x4x256xf32>
    %16 = arith.addf %8, %15 : vector<4x4x256xf32>
    %17 = vector.extract_strided_slice %1 {offsets = [0, 2, 0], sizes = [4, 1, 256], strides = [1, 1, 1]} : vector<4x4x256xf32> to vector<4x1x256xf32>
    %18 = vector.shape_cast %17 : vector<4x1x256xf32> to vector<4x256xf32>
    %19 = vector.shape_cast %18 : vector<4x256xf32> to vector<4x1x256xf32>
    %20 = vector.shape_cast %18 : vector<4x256xf32> to vector<1x4x256xf32>
    %21 = vector.broadcast %19 : vector<4x1x256xf32> to vector<4x4x256xf32>
    %22 = vector.broadcast %20 : vector<1x4x256xf32> to vector<4x4x256xf32>
    %23 = arith.mulf %21, %22 : vector<4x4x256xf32>
    %24 = arith.addf %16, %23 : vector<4x4x256xf32>
    %25 = vector.extract_strided_slice %1 {offsets = [0, 3, 0], sizes = [4, 1, 256], strides = [1, 1, 1]} : vector<4x4x256xf32> to vector<4x1x256xf32>
    %26 = vector.shape_cast %25 : vector<4x1x256xf32> to vector<4x256xf32>
    %27 = vector.shape_cast %26 : vector<4x256xf32> to vector<4x1x256xf32>
    %28 = vector.shape_cast %26 : vector<4x256xf32> to vector<1x4x256xf32>
    %29 = vector.broadcast %27 : vector<4x1x256xf32> to vector<4x4x256xf32>
    %30 = vector.broadcast %28 : vector<1x4x256xf32> to vector<4x4x256xf32>
    %31 = arith.mulf %29, %30 : vector<4x4x256xf32>
    %32 = arith.addf %24, %31 : vector<4x4x256xf32>
    %33 = vector.shape_cast %32 : vector<4x4x256xf32> to vector<16x256xf32>
    %c0_1 = arith.constant 0 : index
    %c0_2 = arith.constant 0 : index
    %34 = vector.load %arg2[%c0_1, %c0_2] : memref<64x16xf32, #tpu.memory_space<vmem>>, vector<64x16xf32>
    %cst = arith.constant dense<0.000000e+00> : vector<64x256xf32>
    %35 = tpu.matmul %34, %33, %cst {dimension_numbers = #tpu.dot_dimension_numbers<[1], [0], [0], [1], [0, 0, 1, 1], [], []>} : vector<64x16xf32>, vector<16x256xf32>, vector<64x256xf32> -> vector<64x256xf32>
    %c0_3 = arith.constant 0 : index
    %c0_4 = arith.constant 0 : index
    %36 = vector.load %arg3[%c0_3, %c0_4] : memref<64x1xf32, #tpu.memory_space<vmem>>, vector<64x1xf32>
    %37 = vector.broadcast %36 : vector<64x1xf32> to vector<64x256xf32>
    %38 = arith.addf %35, %37 : vector<64x256xf32>
    %cst_5 = arith.constant 0.000000e+00 : f32
    %39 = vector.broadcast %cst_5 : f32 to vector<64x256xf32>
    %40 = arith.maximumf %38, %39 : vector<64x256xf32>
    %c0_6 = arith.constant 0 : index
    %c0_7 = arith.constant 0 : index
    %41 = vector.load %arg4[%c0_6, %c0_7] : memref<32x64xf32, #tpu.memory_space<vmem>>, vector<32x64xf32>
    %cst_8 = arith.constant dense<0.000000e+00> : vector<32x256xf32>
    %42 = tpu.matmul %41, %40, %cst_8 {dimension_numbers = #tpu.dot_dimension_numbers<[1], [0], [0], [1], [0, 0, 1, 1], [], []>} : vector<32x64xf32>, vector<64x256xf32>, vector<32x256xf32> -> vector<32x256xf32>
    %c0_9 = arith.constant 0 : index
    %c0_10 = arith.constant 0 : index
    %43 = vector.load %arg5[%c0_9, %c0_10] : memref<32x1xf32, #tpu.memory_space<vmem>>, vector<32x1xf32>
    %44 = vector.broadcast %43 : vector<32x1xf32> to vector<32x256xf32>
    %45 = arith.addf %42, %44 : vector<32x256xf32>
    %c0_11 = arith.constant 0 : index
    %c0_12 = arith.constant 0 : index
    %46 = vector.load %arg6[%c0_11, %c0_12] : memref<32x256xf32, #tpu.memory_space<vmem>>, vector<32x256xf32>
    tpu.vector_store %arg6[%c0_11, %c0_12], %45 {strides = array<i32>} : memref<32x256xf32, #tpu.memory_space<vmem>>, vector<32x256xf32>,
    return
  }
  func.func @transform_0(%arg0: i32) -> (i32, i32) {
    %c0_i32 = arith.constant 0 : i32
    %c0_i32_0 = arith.constant 0 : i32
    return %c0_i32, %arg0 : i32, i32
  }
  func.func @transform_1(%arg0: i32) -> (i32, i32) {
    %c0_i32 = arith.constant 0 : i32
    %c0_i32_0 = arith.constant 0 : i32
    %c0_i32_1 = arith.constant 0 : i32
    return %c0_i32, %c0_i32_0 : i32, i32
  }
  func.func @transform_2(%arg0: i32) -> (i32, i32) {
    %c0_i32 = arith.constant 0 : i32
    %c0_i32_0 = arith.constant 0 : i32
    %c0_i32_1 = arith.constant 0 : i32
    return %c0_i32, %c0_i32_0 : i32, i32
  }
  func.func @transform_3(%arg0: i32) -> (i32, i32) {
    %c0_i32 = arith.constant 0 : i32
    %c0_i32_0 = arith.constant 0 : i32
    %c0_i32_1 = arith.constant 0 : i32
    return %c0_i32, %c0_i32_0 : i32, i32
  }
  func.func @transform_4(%arg0: i32) -> (i32, i32) {
    %c0_i32 = arith.constant 0 : i32
    %c0_i32_0 = arith.constant 0 : i32
    %c0_i32_1 = arith.constant 0 : i32
    return %c0_i32, %c0_i32_0 : i32, i32
  }
  func.func @transform_5(%arg0: i32) -> (i32, i32) {
    %c0_i32 = arith.constant 0 : i32
    %c0_i32_0 = arith.constant 0 : i32
    return %c0_i32, %arg0 : i32, i32
  }
}

</mosaic_0001>

<bundles_post_ra>
// kernel: tpu_custom_call.1
= control target key start
LH: loop header
LB: loop body
LE: loop exit
PB: predicated region body
PF: predicated region fallthrough
CT: control target
= control target key end

     0   :  { %vm31_vm0 = vcmask 1043456   ;;  %v617_v3 = vmov 0   ;;  %vm62_vm1 = vcmask 1041409   ;;  %s926_s0 = inlined_call_operand.vmem [shape: f32[16,256], index: 0, kind: input, shape index: {}]   ;;  %s927_s1 = inlined_call_operand.vmem [shape: f32[64,16], index: 1, kind: input, shape index: {}]   ;;  %s928_s2 = inlined_call_operand.vmem [shape: f32[64,1], index: 2, kind: input, shape index: {}]   ;;  %s929_s3 = inlined_call_operand.vmem [shape: f32[32,64], index: 3, kind: input, shape index: {}]   ;;  %s930_s4 = inlined_call_operand.vmem [shape: f32[32,1], index: 4, kind: input, shape index: {}]   ;;  %s931_s5 = inlined_call_operand.hbm [shape: f32[32,256], index: 5, kind: output, shape index: {}]  }
   0x1   :  { %v254_v0 = vld [vmem:[%s928_s2 + $0x28] sm:$0xff]  ;;  %v21_v1 = vld [vmem:[%s926_s0] sm:$0xff]  ;;  %589 = vset.pattern.permute.xlu1 %v617_v3  ;;  %v23_v4 = vld [vmem:[%s926_s0 + $0x10] sm:$0xff]  ;;  %588 = vset.pattern.permute.xlu0 %v617_v3 }
   0x2   :  { %v22_v2 = vld [vmem:[%s926_s0 + $0x8] sm:$0xff]  ;;  %v24_v5 = vld [vmem:[%s926_s0 + $0x18] sm:$0xff]  ;;  %284 = vperm.xlu1 %589, %v254_v0   ;;  %590 = vset.pattern.permute.xlu2 %v617_v3 }
   0x3   :  { %v29_v6 = vrot.slane %v22_v2, 4  ;;  %v30_v7 = vrot.slane %v24_v5, 4 }
   0x4   :  { %10 = vsyncpa [#allocation3], 0  ;;  %vm64_vm2 = vcmask 1042434   ;;  %vm66_vm3 = vcmask 1043459   ;;  %vm312_vm4 = vcmask 130048   ;;  %vm463_vm5 = vcmask 523264  }
   0x5   :  { %v667_v8 = vsel %vm31_vm0, %v21_v1, %v29_v6  ;;  %v33_v9 = vsel %vm31_vm0, %v29_v6, %v21_v1  ;;  %v673_v11 = vsel %vm31_vm0, %v23_v4, %v30_v7  ;;  %v36_v12 = vsel %vm31_vm0, %v30_v7, %v23_v4  ;;  %s548_s22 = sshll.u32 %s931_s5, 4  ;;  %s619_s23 = smov 256   ;;  %s549_s22 = int_to_ptr.hbm [resolvable:$true] %s548_s22 }
   0x6   :  { %v670_v10 = vrot.slane %v33_v9, 4  ;;  %v38_v13 = vperm.slane %v667_v8, 0  ;;  %v677_v14 = vrot.slane %v36_v12, 4  ;;  %v39_v15 = vperm.slane %v667_v8, 4  ;;  %s620_s24 = smov 16  }
   0x7   :  { %v42_v16 = vperm.slane %v673_v11, 0  ;;  %v43_v17 = vperm.slane %v673_v11, 4  ;;  %v81_v20 = vperm.slane %v667_v8, 1  ;;  %v82_v21 = vperm.slane %v667_v8, 5 }
   0x8   :  { %v40_v18 = vperm.slane %v670_v10, 0  ;;  %v41_v19 = vperm.slane %v670_v10, 4  ;;  %v44_v22 = vperm.slane %v677_v14, 0  ;;  %v45_v23 = vperm.slane %v677_v14, 4 }
   0x9   :  { %v58_v24 = vperm.slane %v42_v16, 0  ;;  %v59_v25 = vperm.slane %v43_v17, 0  ;;  %v83_v28 = vperm.slane %v670_v10, 1  ;;  %v84_v29 = vperm.slane %v670_v10, 5 }
   0xa   :  { %v63_v26 = vsel %vm62_vm1, %v40_v18, %v38_v13  ;;  %v68_v27 = vsel %vm62_vm1, %v41_v19, %v39_v15  ;;  %v60_v30 = vperm.slane %v44_v22, 0  ;;  %v61_v31 = vperm.slane %v45_v23, 0 }
   0xb   :  { %v65_v32 = vsel %vm64_vm2, %v42_v16, %v63_v26  ;;  %v69_v33 = vsel %vm64_vm2, %v43_v17, %v68_v27  ;;  %v85_v36 = vperm.slane %v673_v11, 1  ;;  %v86_v37 = vperm.slane %v673_v11, 5 }
   0xc   :  { %v703_v34 = vsel %vm66_vm3, %v44_v22, %v65_v32  ;;  %v706_v35 = vsel %vm66_vm3, %v45_v23, %v69_v33  ;;  %v87_v42 = vperm.slane %v677_v14, 1  ;;  %v88_v43 = vperm.slane %v677_v14, 5 }
   0xd   :  { %v77_v38 = vmul.f32 %v703_v34, %v58_v24  ;;  %v78_v39 = vmul.f32 %v706_v35, %v59_v25  ;;  %v79_v40 = vmul.f32 %v703_v34, %v60_v30  ;;  %v80_v41 = vmul.f32 %v706_v35, %v61_v31 }
   0xe   :  { %v101_v44 = vperm.slane %v85_v36, 1  ;;  %v102_v45 = vperm.slane %v86_v37, 1  ;;  %v105_v46 = vsel %vm62_vm1, %v83_v28, %v81_v20  ;;  %v108_v47 = vsel %vm62_vm1, %v84_v29, %v82_v21 }
   0xf   :  { %v129_v48 = vperm.slane %v667_v8, 2  ;;  %v130_v49 = vperm.slane %v667_v8, 6  ;;  %v103_v50 = vperm.slane %v87_v42, 1  ;;  %v104_v51 = vperm.slane %v88_v43, 1 }
  0x10   :  { %v106_v52 = vsel %vm64_vm2, %v85_v36, %v105_v46  ;;  %v109_v53 = vsel %vm64_vm2, %v86_v37, %v108_v47  ;;  %v131_v56 = vperm.slane %v670_v10, 2  ;;  %v132_v57 = vperm.slane %v670_v10, 6 }
  0x11   :  { %v731_v54 = vsel %vm66_vm3, %v87_v42, %v106_v52  ;;  %v734_v55 = vsel %vm66_vm3, %v88_v43, %v109_v53  ;;  %v133_v62 = vperm.slane %v673_v11, 2  ;;  %v134_v63 = vperm.slane %v673_v11, 6  ;;  %v256_v52 = vld [vmem:[%s928_s2 + $0x38] sm:$0xff]  ;;  %v253_v53 = vld [vmem:[%s928_s2 + $0x20] sm:$0xff] }
  0x12   :  { %v117_v58 = vmul.f32 %v731_v54, %v101_v44  ;;  %v118_v59 = vmul.f32 %v734_v55, %v102_v45  ;;  %v119_v60 = vmul.f32 %v731_v54, %v103_v50  ;;  %v120_v61 = vmul.f32 %v734_v55, %v104_v51  ;;  %294 = vperm.xlu0 %588, %v256_v52  }
  0x13   :  { %v135_v0 = vperm.slane %v677_v14, 2  ;;  %v136_v1 = vperm.slane %v677_v14, 6  ;;  %v149_v6 = vperm.slane %v133_v62, 2  ;;  %v150_v7 = vperm.slane %v134_v63, 2  ;;  %279 = vperm.xlu1 %589, %v253_v53  }
  0x14   :  { %v125_v2 = vadd.f32 %v117_v58, %v77_v38  ;;  %v126_v3 = vadd.f32 %v118_v59, %v78_v39  ;;  %v127_v4 = vadd.f32 %v119_v60, %v79_v40  ;;  %v128_v5 = vadd.f32 %v120_v61, %v80_v41 }
  0x15   :  { %v151_v9 = vperm.slane %v135_v0, 2  ;;  %v152_v12 = vperm.slane %v136_v1, 2  ;;  %v153_v16 = vsel %vm62_vm1, %v131_v56, %v129_v48  ;;  %v156_v17 = vsel %vm62_vm1, %v132_v57, %v130_v49 }
  0x16   :  { %v177_v22 = vperm.slane %v667_v8, 3  ;;  %v178_v23 = vperm.slane %v667_v8, 7  ;;  %v154_v24 = vsel %vm64_vm2, %v133_v62, %v153_v16  ;;  %v157_v25 = vsel %vm64_vm2, %v134_v63, %v156_v17  ;;  %v250_v8 = vld [vmem:[%s928_s2 + $0x8] sm:$0xff] }
  0x17   :  { %v179_v26 = vperm.slane %v670_v10, 3  ;;  %v180_v27 = vperm.slane %v670_v10, 7  ;;  %v763_v30 = vsel %vm66_vm3, %v135_v0, %v154_v24  ;;  %v766_v31 = vsel %vm66_vm3, %v136_v1, %v157_v25 }
  0x18   :  { %v181_v32 = vperm.slane %v673_v11, 3  ;;  %v182_v33 = vperm.slane %v673_v11, 7  ;;  %v165_v36 = vmul.f32 %v763_v30, %v149_v6  ;;  %v166_v37 = vmul.f32 %v766_v31, %v150_v7 }
  0x19   :  { %v167_v38 = vmul.f32 %v763_v30, %v151_v9  ;;  %v168_v39 = vmul.f32 %v766_v31, %v152_v12  ;;  %v183_v40 = vperm.slane %v677_v14, 3  ;;  %v184_v41 = vperm.slane %v677_v14, 7 }
  0x1a   :  { %v197_v42 = vperm.slane %v181_v32, 3  ;;  %v198_v43 = vperm.slane %v182_v33, 3  ;;  %v173_v44 = vadd.f32 %v165_v36, %v125_v2  ;;  %v174_v45 = vadd.f32 %v166_v37, %v126_v3 }
  0x1b   :  { %v175_v46 = vadd.f32 %v167_v38, %v127_v4  ;;  %v176_v47 = vadd.f32 %v168_v39, %v128_v5  ;;  %v199_v50 = vperm.slane %v183_v40, 3  ;;  %v200_v11 = vperm.slane %v184_v41, 3 }
  0x1c   :  { %v201_v51 = vsel %vm62_vm1, %v179_v26, %v177_v22  ;;  %v204_v14 = vsel %vm62_vm1, %v180_v27, %v178_v23  ;;  %v54_v60 = vperm.slane %v38_v13, 0  ;;  %v55_v61 = vperm.slane %v39_v15, 0 }
  0x1d   :  { %v202_v58 = vsel %vm64_vm2, %v181_v32, %v201_v51  ;;  %v205_v59 = vsel %vm64_vm2, %v182_v33, %v204_v14  ;;  %v56_v0 = vperm.slane %v40_v18, 0  ;;  %v57_v1 = vperm.slane %v41_v19, 0 }
  0x1e   :  { %v203_v62 = vsel %vm66_vm3, %v183_v40, %v202_v58  ;;  %v206_v63 = vsel %vm66_vm3, %v184_v41, %v205_v59  ;;  %v73_v13 = vmul.f32 %v703_v34, %v54_v60  ;;  %v74_v15 = vmul.f32 %v706_v35, %v55_v61 }
  0x1f   :  { %v213_v2 = vmul.f32 %v203_v62, %v197_v42  ;;  %v214_v3 = vmul.f32 %v206_v63, %v198_v43  ;;  %v215_v4 = vmul.f32 %v203_v62, %v199_v50  ;;  %v216_v5 = vmul.f32 %v206_v63, %v200_v11 }
  0x20   :  { %v75_v6 = vmul.f32 %v703_v34, %v56_v0  ;;  %v76_v7 = vmul.f32 %v706_v35, %v57_v1  ;;  %v97_v18 = vperm.slane %v81_v20, 1  ;;  %v98_v19 = vperm.slane %v82_v21, 1 }
  0x21   :  { %v221_v9 = vadd.f32 %v213_v2, %v173_v44  ;;  %v222_v12 = vadd.f32 %v214_v3, %v174_v45  ;;  %v223_v16 = vadd.f32 %v215_v4, %v175_v46  ;;  %v224_v17 = vadd.f32 %v216_v5, %v176_v47  ;;  %v242_v2 = vld [vmem:[%s927_s1 + $0x8] sm:$0xff]  ;;  %v252_v3 = vld [vmem:[%s928_s2 + $0x18] sm:$0xff]  ;;  %v243_v4 = vld [vmem:[%s927_s1 + $0x10] sm:$0xff] }
  0x22   :  { %v99_v24 = vperm.slane %v83_v28, 1  ;;  %v100_v25 = vperm.slane %v84_v29, 1  ;;  %v145_v35 = vperm.slane %v129_v48, 2  ;;  %v146_v33 = vperm.slane %v130_v49, 2  ;;  %v255_v28 = vld [vmem:[%s928_s2 + $0x30] sm:$0xff]  ;;  %v249_v29 = vld [vmem:[%s928_s2] sm:$0xff]  ;;  %274 = vperm.xlu2 %590, %v252_v3  }
  0x23   :  { %v235_v32 = vrot.slane %v222_v12, 4  ;;  %v236_v34 = vrot.slane %v224_v17, 4  ;;  %v113_v36 = vmul.f32 %v731_v54, %v97_v18  ;;  %v114_v20 = vmul.f32 %v734_v55, %v98_v19  ;;  %289 = vperm.xlu0 %588, %v255_v28   ;;  %259 = vperm.xlu1 %589, %v249_v29   ;;  %v251_v5 = vld [vmem:[%s928_s2 + $0x10] sm:$0xff]  ;;  %v442_v12 = vld [vmem:[%s930_s4 + $0x18] sm:$0xff] }
  0x24   :  { %v115_v21 = vmul.f32 %v731_v54, %v99_v24  ;;  %v116_v37 = vmul.f32 %v734_v55, %v100_v25  ;;  %v147_v38 = vperm.slane %v131_v56, 2  ;;  %v148_v54 = vperm.slane %v132_v57, 2  ;;  %v247_v17 = vld [vmem:[%s927_s1 + $0x30] sm:$0xff]  ;;  %v248_v18 = vld [vmem:[%s927_s1 + $0x38] sm:$0xff] }
  0x25   :  { %v239_v48 = vsel %vm31_vm0, %v221_v9, %v235_v32  ;;  %v240_v49 = vsel %vm31_vm0, %v223_v16, %v236_v34  ;;  %v121_v55 = vadd.f32 %v113_v36, %v73_v13  ;;  %v122_v39 = vadd.f32 %v114_v20, %v74_v15  ;;  %v244_v13 = vld [vmem:[%s927_s1 + $0x18] sm:$0xff]  ;;  %v440_v15 = vld [vmem:[%s930_s4 + $0x8] sm:$0xff]  ;;  %v245_v9 = vld [vmem:[%s927_s1 + $0x20] sm:$0xff] }
  0x26   :  { %301 = vst [vmem:[#allocation1 + $0x10] ss:$2 sm:$0xff] %v239_v48  ;;  %v123_v40 = vadd.f32 %v115_v21, %v75_v6  ;;  %v124_v41 = vadd.f32 %v116_v37, %v76_v7  ;;  %v161_v42 = vmul.f32 %v763_v30, %v145_v35  ;;  %v162_v43 = vmul.f32 %v766_v31, %v146_v33  ;;  %v441_v6 = vld [vmem:[%s930_s4 + $0x10] sm:$0xff]  ;;  %v439_v7 = vld [vmem:[%s930_s4] sm:$0xff]  ;;  %v246_v16 = vld [vmem:[%s927_s1 + $0x28] sm:$0xff] }
  0x27   :  { %303 = vst [vmem:[#allocation1 + $0x11] ss:$2 sm:$0xff] %v240_v49  ;;  %v163_v44 = vmul.f32 %v763_v30, %v147_v38  ;;  %v164_v45 = vmul.f32 %v766_v31, %v148_v54  ;;  %v193_v56 = vperm.slane %v177_v22, 3  ;;  %v194_v57 = vperm.slane %v178_v23, 3 }
  0x28   :  { %v195_v46 = vperm.slane %v179_v26, 3  ;;  %v196_v47 = vperm.slane %v180_v27, 3  ;;  %v169_v50 = vadd.f32 %v161_v42, %v121_v55  ;;  %v170_v11 = vadd.f32 %v162_v43, %v122_v39 }
  0x29   :  { %v171_v51 = vadd.f32 %v163_v44, %v123_v40  ;;  %v172_v14 = vadd.f32 %v164_v45, %v124_v41  ;;  %v209_v52 = vmul.f32 %v203_v62, %v193_v56  ;;  %v210_v30 = vmul.f32 %v206_v63, %v194_v57 }
  0x2a   :  { %v211_v53 = vmul.f32 %v203_v62, %v195_v46  ;;  %v212_v31 = vmul.f32 %v206_v63, %v196_v47  ;;  %v241_v63 = vld [vmem:[%s927_s1] sm:$0xff]  ;;  %269 = vperm.xlu2 %590, %v251_v5  }
  0x2b   :  { %v218_v58 = vadd.f32 %v210_v30, %v170_v11  ;;  %v217_v22 = vadd.f32 %v209_v52, %v169_v50  ;;  %264 = vperm.xlu0 %588, %v250_v8   ;;  %455 = vperm.xlu1 %589, %v441_v6   ;;  %v436_v6 = vld [vmem:[%s929_s3 + $0x8] sm:$0xff] }
  0x2c   :  { %v220_v59 = vadd.f32 %v212_v31, %v172_v14  ;;  %v219_v23 = vadd.f32 %v211_v53, %v171_v51 }
  0x2d   :  { %v233_v27 = vrot.slane %v218_v58, 4 }
  0x2e   :  { %v306_v26 = vld.sshfl [vmem:[#allocation1 + $0x10] sm:$0xff pattern:$0x75316420]  ;;  %v307_v10 = vld.sshfl [vmem:[#allocation1 + $0x18] sm:$0xff pattern:$0x75316420] }
  0x2f   :  { %351 = vmatpush.msra.mxu0 %v306_v26  ;;  %392 = vmatpush.msra.mxu1 %v307_v10  ;;  %v234_v60 = vrot.slane %v220_v59, 4  ;;  %v237_v61 = vsel %vm31_vm0, %v217_v22, %v233_v27 }
  0x30   :  { %297 = vst [vmem:[#allocation1] ss:$2 sm:$0xff] %v237_v61 }
  0x31   :  { %v238_v62 = vsel %vm31_vm0, %v219_v23, %v234_v60 }
  0x32   :  { %299 = vst [vmem:[#allocation1 + $0x1] ss:$2 sm:$0xff] %v238_v62  ;;  %445 = vperm.xlu2 %590, %v439_v7   ;;  %v437_v7 = vld [vmem:[%s929_s3 + $0x10] sm:$0xff] }
  0x33   :  { %450 = vperm.xlu0 %588, %v440_v15   ;;  %v435_v15 = vld [vmem:[%s929_s3] sm:$0xff] }
  0x39   :  { %v304_v0 = vld.sshfl [vmem:[#allocation1] sm:$0xff pattern:$0x75316420]  ;;  %v305_v1 = vld.sshfl [vmem:[#allocation1 + $0x8] sm:$0xff pattern:$0x75316420] }
  0x3a   :  { %352 = vmatpush.msra.mxu0 %v304_v0  ;;  %393 = vmatpush.msra.mxu1 %v305_v1 }
  0x3b   :  { %560 = vmatmul.msk.f32.vlgmr.msra.gmra.mxu0 %vm312_vm4, %v241_v63  ;;  %568 = vmatmul.msk.f32.vlgmr.msra.gmra.mxu1 %vm312_vm4, %v241_v63 }
  0x3c   :  { %460 = vperm.xlu2 %590, %v442_v12  }
  0x43   :  { %561 = vmatmul.msk.f32.gmra.mxu0 %vm312_vm4, %v242_v2  ;;  %569 = vmatmul.msk.f32.gmra.mxu1 %vm312_vm4, %v242_v2 }
  0x4b   :  { %562 = vmatmul.msk.f32.gmra.mxu0 %vm312_vm4, %v243_v4  ;;  %570 = vmatmul.msk.f32.gmra.mxu1 %vm312_vm4, %v243_v4 }
  0x53   :  { %563 = vmatmul.msk.f32.gmra.mxu0 %vm312_vm4, %v244_v13  ;;  %571 = vmatmul.msk.f32.gmra.mxu1 %vm312_vm4, %v244_v13 }
  0x5b   :  { %564 = vmatmul.msk.f32.gmra.mxu0 %vm312_vm4, %v245_v9  ;;  %572 = vmatmul.msk.f32.gmra.mxu1 %vm312_vm4, %v245_v9  ;;  %v438_v9 = vld [vmem:[%s929_s3 + $0x18] sm:$0xff]  ;;  %s618_s3 = smov [#allocation2]  }
  0x5c   :  { %s546_s19 = sshll.u32 %s618_s3, 4  ;;  %s547_s19 = int_to_ptr.vmem [resolvable:$true] %s546_s19 }
  0x63   :  { %565 = vmatmul.msk.f32.gmra.mxu0 %vm312_vm4, %v246_v16  ;;  %573 = vmatmul.msk.f32.gmra.mxu1 %vm312_vm4, %v246_v16 }
  0x6b   :  { %566 = vmatmul.msk.f32.gmra.mxu0 %vm312_vm4, %v247_v17  ;;  %574 = vmatmul.msk.f32.gmra.mxu1 %vm312_vm4, %v247_v17 }
  0x73   :  { %567 = vmatmul.msk.f32.gmra.mxu0 %vm312_vm4, %v248_v18  ;;  %575 = vmatmul.msk.f32.gmra.mxu1 %vm312_vm4, %v248_v18 }
  0x74   :  { %v285_v48 = vpop.permute.xlu1 %284 }
  0x7c   :  { %v275_v54 = vpop.permute.xlu2 %274 }
  0x84   :  { %v295_v29 = vpop.permute.xlu0 %294  ;;  %v270_v52 = vpop.permute.xlu2 %269 }
  0x85   :  { %v280_v39 = vpop.permute.xlu1 %279 }
  0x8c   :  { %v446_v12 = vpop.permute.xlu2 %445 }
  0x95   :  { %v290_v55 = vpop.permute.xlu0 %289  ;;  %v260_v10 = vpop.permute.xlu1 %259 }
  0x9d   :  { %v265_v59 = vpop.permute.xlu0 %264 }
  0xb8   :  { %v354_v19 = vpop.f32.mrf.mxu0  ;;  %v395_v24 = vpop.f32.mrf.mxu1 }
  0xb9   :  { %v355_v63 = vadd.f32 %v354_v19, %v260_v10  ;;  %v396_v0 = vadd.f32 %v395_v24, %v260_v10  ;;  %v451_v24 = vpop.permute.xlu0 %450 }
  0xbb   :  { %v419_v5 = vmax.f32 %v355_v63, 0.0  ;;  %v420_v13 = vmax.f32 %v396_v0, 0.0 }
  0xc0   :  { %v357_v25 = vpop.f32.mrf.mxu0  ;;  %v398_v32 = vpop.f32.mrf.mxu1 }
  0xc1   :  { %v358_v27 = vadd.f32 %v357_v25, %v265_v59  ;;  %v399_v60 = vadd.f32 %v398_v32, %v265_v59 }
  0xc3   :  { %v421_v3 = vmax.f32 %v358_v27, 0.0  ;;  %v422_v4 = vmax.f32 %v399_v60, 0.0 }
  0xc8   :  { %v360_v34 = vpop.f32.mrf.mxu0  ;;  %v401_v35 = vpop.f32.mrf.mxu1 }
  0xc9   :  { %v361_v8 = vadd.f32 %v360_v34, %v270_v52  ;;  %v402_v22 = vadd.f32 %v401_v35, %v270_v52 }
  0xcb   :  { %v423_v1 = vmax.f32 %v361_v8, 0.0  ;;  %v424_v2 = vmax.f32 %v402_v22, 0.0 }
  0xd0   :  { %v363_v33 = vpop.f32.mrf.mxu0  ;;  %v404_v36 = vpop.f32.mrf.mxu1 }
  0xd1   :  { %v364_v30 = vadd.f32 %v363_v33, %v275_v54  ;;  %v405_v53 = vadd.f32 %v404_v36, %v275_v54  ;;  %v456_v33 = vpop.permute.xlu1 %455 }
  0xd3   :  { %v425_v61 = vmax.f32 %v364_v30, 0.0  ;;  %v426_v62 = vmax.f32 %v405_v53, 0.0 }
  0xd8   :  { %v366_v20 = vpop.f32.mrf.mxu0  ;;  %v407_v21 = vpop.f32.mrf.mxu1 }
  0xd9   :  { %v367_v50 = vadd.f32 %v366_v20, %v280_v39  ;;  %v408_v11 = vadd.f32 %v407_v21, %v280_v39 }
  0xdb   :  { %v427_v23 = vmax.f32 %v367_v50, 0.0  ;;  %v428_v26 = vmax.f32 %v408_v11, 0.0 }
  0xe0   :  { %v369_v37 = vpop.f32.mrf.mxu0  ;;  %v410_v28 = vpop.f32.mrf.mxu1 }
  0xe1   :  { %v370_v56 = vadd.f32 %v369_v37, %v285_v48  ;;  %v411_v57 = vadd.f32 %v410_v28, %v285_v48  ;;  %v461_v28 = vpop.permute.xlu2 %460 }
  0xe3   :  { %v429_v31 = vmax.f32 %v370_v56, 0.0  ;;  %v430_v58 = vmax.f32 %v411_v57, 0.0 }
  0xe8   :  { %v372_v49 = vpop.f32.mrf.mxu0  ;;  %v413_v38 = vpop.f32.mrf.mxu1 }
  0xe9   :  { %v373_v42 = vadd.f32 %v372_v49, %v290_v55  ;;  %v414_v43 = vadd.f32 %v413_v38, %v290_v55 }
  0xeb   :  { %v431_v51 = vmax.f32 %v373_v42, 0.0  ;;  %v432_v14 = vmax.f32 %v414_v43, 0.0 }
  0xf0   :  { %v375_v40 = vpop.f32.mrf.mxu0  ;;  %v416_v41 = vpop.f32.mrf.mxu1 }
  0xf1   :  { %v376_v44 = vadd.f32 %v375_v40, %v295_v29  ;;  %v417_v45 = vadd.f32 %v416_v41, %v295_v29 }
  0xf3   :  { %v433_v46 = vmax.f32 %v376_v44, 0.0  ;;  %v434_v47 = vmax.f32 %v417_v45, 0.0 }
  0xf5   :  { %484 = vmatpush.msra.mxu2 %v433_v46  ;;  %513 = vmatpush.msra.mxu3 %v434_v47 }
  0xf7   :  { %485 = vmatpush.msra.mxu2 %v431_v51  ;;  %514 = vmatpush.msra.mxu3 %v432_v14 }
  0xf9   :  { %486 = vmatpush.msra.mxu2 %v429_v31  ;;  %515 = vmatpush.msra.mxu3 %v430_v58 }
  0xfb   :  { %487 = vmatpush.msra.mxu2 %v427_v23  ;;  %516 = vmatpush.msra.mxu3 %v428_v26 }
  0xfd   :  { %488 = vmatpush.msra.mxu2 %v425_v61  ;;  %517 = vmatpush.msra.mxu3 %v426_v62 }
  0xff   :  { %489 = vmatpush.msra.mxu2 %v423_v1  ;;  %518 = vmatpush.msra.mxu3 %v424_v2 }
 0x101   :  { %490 = vmatpush.msra.mxu2 %v421_v3  ;;  %519 = vmatpush.msra.mxu3 %v422_v4 }
 0x103   :  { %491 = vmatpush.msra.mxu2 %v419_v5  ;;  %520 = vmatpush.msra.mxu3 %v420_v13 }
 0x104   :  { %576 = vmatmul.msk.f32.vlgmr.msra.gmra.mxu2 %vm463_vm5, %v435_v15  ;;  %580 = vmatmul.msk.f32.vlgmr.msra.gmra.mxu3 %vm463_vm5, %v435_v15 }
 0x10c   :  { %577 = vmatmul.msk.f32.gmra.mxu2 %vm463_vm5, %v436_v6  ;;  %581 = vmatmul.msk.f32.gmra.mxu3 %vm463_vm5, %v436_v6 }
 0x114   :  { %578 = vmatmul.msk.f32.gmra.mxu2 %vm463_vm5, %v437_v7  ;;  %582 = vmatmul.msk.f32.gmra.mxu3 %vm463_vm5, %v437_v7 }
 0x11c   :  { %579 = vmatmul.msk.f32.gmra.mxu2 %vm463_vm5, %v438_v9  ;;  %583 = vmatmul.msk.f32.gmra.mxu3 %vm463_vm5, %v438_v9 }
 0x187   :  { %v493_v16 = vpop.f32.mrf.mxu2  ;;  %v522_v17 = vpop.f32.mrf.mxu3 }
 0x188   :  { %v494_v18 = vadd.f32 %v493_v16, %v446_v12  ;;  %v523_v19 = vadd.f32 %v522_v17, %v446_v12 }
 0x18a   :  { %534 = vst [vmem:[#allocation2] sm:$0xff] %v494_v18 }
 0x18b   :  { %535 = vst [vmem:[#allocation2 + $0x8] sm:$0xff] %v523_v19 }
 0x18f   :  { %v496_v25 = vpop.f32.mrf.mxu2  ;;  %v525_v32 = vpop.f32.mrf.mxu3 }
 0x190   :  { %v497_v34 = vadd.f32 %v496_v25, %v451_v24  ;;  %v526_v35 = vadd.f32 %v525_v32, %v451_v24 }
 0x192   :  { %536 = vst [vmem:[#allocation2 + $0x10] sm:$0xff] %v497_v34 }
 0x193   :  { %537 = vst [vmem:[#allocation2 + $0x18] sm:$0xff] %v526_v35 }
 0x197   :  { %v499_v36 = vpop.f32.mrf.mxu2  ;;  %v528_v20 = vpop.f32.mrf.mxu3 }
 0x198   :  { %v500_v21 = vadd.f32 %v499_v36, %v456_v33  ;;  %v529_v37 = vadd.f32 %v528_v20, %v456_v33 }
 0x19a   :  { %538 = vst [vmem:[#allocation2 + $0x20] sm:$0xff] %v500_v21 }
 0x19b   :  { %539 = vst [vmem:[#allocation2 + $0x28] sm:$0xff] %v529_v37 }
 0x19f   :  { %v502_v29 = vpop.f32.mrf.mxu2  ;;  %v531_v48 = vpop.f32.mrf.mxu3 }
 0x1a0   :  { %v503_v49 = vadd.f32 %v502_v29, %v461_v28  ;;  %v532_v38 = vadd.f32 %v531_v48, %v461_v28 }
 0x1a2   :  { %540 = vst [vmem:[#allocation2 + $0x30] sm:$0xff] %v503_v49 }
 0x1a3   :  { %541 = vst [vmem:[#allocation2 + $0x38] sm:$0xff] %v532_v38 }
 0x1a4   :  { %554 = dma.vmem_to_hbm [thread:$0]  %s547_s19, 1024, %s549_s22, [#allocation3], %s619_s23, %s619_s23, %s620_s24  }
 0x1a5   :  { %615 = dma.done.wait [#allocation3], 1024  }
 0x1a6   :  { %616 = vsyncadd [#allocation3], 4294966272 }
 0x1a7   :  { %559 = vsyncpa [#allocation3], 1 }

</bundles_post_ra>
